<compile_context>
chip_gen: v6e
topology: v6e:2x2x1
jax: 0.10.0
libtpu: 0.0.40
codegen_flags: <defaults>
</compile_context>

<pallas_src>
import functools

import jax
import jax.numpy as jnp
from jax.experimental import pallas as pl
from jax.experimental.pallas import tpu as pltpu


def _tcrmsnorm_kernel(x_ref, g_ref, b_ref, o_ref, *, eps, inv_d):
    # x_ref: (tS, D) activations tile
    # g_ref: (1, D)  gamma(t) for this batch element
    # b_ref: (1, D)  beta(t)  for this batch element
    x = x_ref[...].astype(jnp.float32)
    g = g_ref[...].astype(jnp.float32)
    b = b_ref[...].astype(jnp.float32)

    # Block last dim == full D, so the reduction is exactly over d_model.
    ms = jnp.sum(x * x, axis=-1, keepdims=True) * inv_d   # (tS, 1)
    inv = jax.lax.rsqrt(ms + eps)                          # EUP, (tS, 1)
    o_ref[...] = (g * (x * inv) + b).astype(o_ref.dtype)


def _vmem_budget_and_limit():
    # Per-generation scoped-VMEM: ask for ~3/4 of physical (capped at 96 MiB),
    # and size tiles against ~3/4 of that for double-buffer headroom.
    #   v7x (64 MiB/TC):  limit 48 MiB, budget 36 MiB
    #   v5e/v6e (128 MiB): limit 96 MiB, budget 72 MiB
    try:
        cap = int(pltpu.get_tpu_info().vmem_capacity_bytes)
    except Exception:  # conservative fallback (v7x per-TC size)
        cap = 64 * 1024 * 1024
    limit = min((cap * 3) // 4, 96 * 1024 * 1024)
    budget = (limit * 3) // 4
    return budget, limit


def _pick_tile_s(S, B, D, in_bytes, vmem_budget):
    """Rows per sequence tile: multiple of 8 (or the full S), balanced so the
    ragged tail wastes < 8 rows, sized to the VMEM budget."""
    # Double-buffered input + output tiles, plus the in-kernel f32 working copy
    # (x upcast + f32 result before downcast) when the I/O dtype is narrow.
    f32_extra = 8 if in_bytes < 4 else 0
    per_row = max(1, D * (4 * in_bytes + f32_extra))
    ts_max = max(8, min(2048, (vmem_budget // per_row) // 8 * 8))

    # With B == 1, make sure the grid has >= 2 steps so both TCs get work.
    want_split = (B == 1 and S >= 16)
    if S <= ts_max and not want_split:
        return S                       # single tile; full-dim block is always legal
    n_tiles = max(pl.cdiv(S, ts_max), 2 if want_split else 1)
    ts = ((pl.cdiv(S, n_tiles) + 7) // 8) * 8   # balanced, multiple of 8
    return min(ts, ts_max)


def time_conditional_rms_norm(x, t, wg, bg, wb, bb, *, eps=1e-6):
    """x: (B, S, D); t: (B, d_t); wg/wb: (d_t, D) (torch weight transposed);
    bg/bb: (D,).  Returns (B, S, D) in x.dtype."""
    B, S, D = x.shape
    in_bytes = jnp.dtype(x.dtype).itemsize

    # Tiny projections done in plain JAX at full f32 precision.
    g = (jnp.dot(t, wg, precision=jax.lax.Precision.HIGHEST) + bg)
    b = (jnp.dot(t, wb, precision=jax.lax.Precision.HIGHEST) + bb)
    g = g.reshape(B, 1, D).astype(x.dtype)
    b = b.reshape(B, 1, D).astype(x.dtype)

    budget, vmem_limit = _vmem_budget_and_limit()
    tS = _pick_tile_s(S, B, D, in_bytes, budget)
    n_s_tiles = pl.cdiv(S, tS)

    kernel = functools.partial(_tcrmsnorm_kernel, eps=float(eps), inv_d=1.0 / D)

    cost = pl.CostEstimate(
        flops=5 * B * S * D,
        transcendentals=B * S,
        bytes_accessed=2 * B * S * D * in_bytes + 2 * B * D * in_bytes,
    )

    return pl.pallas_call(
        kernel,
        out_shape=jax.ShapeDtypeStruct((B, S, D), x.dtype),
        grid_spec=pltpu.PrefetchScalarGridSpec(
            num_scalar_prefetch=0,
            grid=(B, n_s_tiles),  # S innermost: gamma/beta stay resident across si
            in_specs=[
                pl.BlockSpec((None, tS, D), lambda bi, si: (bi, si, 0)),  # x
                pl.BlockSpec((None, 1, D), lambda bi, si: (bi, 0, 0)),    # gamma(t)
                pl.BlockSpec((None, 1, D), lambda bi, si: (bi, 0, 0)),    # beta(t)
            ],
            out_specs=pl.BlockSpec((None, tS, D), lambda bi, si: (bi, si, 0)),
        ),
        compiler_params=pltpu.CompilerParams(
            dimension_semantics=("parallel", "parallel"),
            vmem_limit_bytes=vmem_limit,
        ),
        cost_estimate=cost,
    )(x, g, b)


def _reference(x, t, wg, bg, wb, bb, eps=1e-6):
    B = x.shape[0]
    g = (jnp.dot(t, wg, precision=jax.lax.Precision.HIGHEST) + bg).reshape(B, 1, -1)
    b = (jnp.dot(t, wb, precision=jax.lax.Precision.HIGHEST) + bb).reshape(B, 1, -1)
    ms = jnp.mean(x * x, axis=-1, keepdims=True)
    return g * x * jax.lax.rsqrt(ms + eps) + b


if __name__ == "__main__":
    B, S, D, d_t = 2, 8, 32, 16

    key = jax.random.PRNGKey(0)
    kx, kt, kwg, kbg, kwb, kbb = jax.random.split(key, 6)

    x = jax.random.normal(kx, (B, S, D), dtype=jnp.float32)
    t = jax.random.normal(kt, (B, d_t), dtype=jnp.float32)

    # nn.Linear(d_t, d_model) params stored as (d_t, D) == torch weight
    # transposed, so y = t @ W + bias.
    lim = 1.0 / (d_t ** 0.5)
    wg = jax.random.uniform(kwg, (d_t, D), jnp.float32, -lim, lim)
    bg = jax.random.uniform(kbg, (D,), jnp.float32, -lim, lim)
    wb = jax.random.uniform(kwb, (d_t, D), jnp.float32, -lim, lim)
    bb = jax.random.uniform(kbb, (D,), jnp.float32, -lim, lim)

    out = time_conditional_rms_norm(x, t, wg, bg, wb, bb)
    out = jax.block_until_ready(out)

    ref = _reference(x, t, wg, bg, wb, bb)
    assert out.shape == (B, S, D)
    assert jnp.allclose(out, ref, atol=1e-5, rtol=1e-5)

    print("KERNEL_OK")
</pallas_src>

<mosaic_0001>
module attributes {stable_mosaic.version = 11 : i64} {
  func.func @_tcrmsnorm_kernel(%arg0: i32, %arg1: i32, %arg2: memref<1x8x32xf32, #tpu.memory_space<vmem>>, %arg3: memref<1x1x32xf32, #tpu.memory_space<vmem>>, %arg4: memref<1x1x32xf32, #tpu.memory_space<vmem>>, %arg5: memref<1x8x32xf32, #tpu.memory_space<vmem>>) attributes {dimension_semantics = [#tpu.dimension_semantics<parallel>, #tpu.dimension_semantics<parallel>], iteration_bounds = array<i64: 2, 1>, scalar_prefetch = 0 : i64, scratch_operands = 0 : i64, tpu.core_type = #tpu.core_type<tc>, window_params = [{transform_indices = @transform_0, window_bounds = array<i64: 1, 8, 32>}, {transform_indices = @transform_1, window_bounds = array<i64: 1, 1, 32>}, {transform_indices = @transform_2, window_bounds = array<i64: 1, 1, 32>}, {transform_indices = @transform_3, window_bounds = array<i64: 1, 8, 32>}]} {
    %c0 = arith.constant 0 : index
    %c0_0 = arith.constant 0 : index
    %c0_1 = arith.constant 0 : index
    %0 = vector.load %arg2[%c0, %c0_0, %c0_1] : memref<1x8x32xf32, #tpu.memory_space<vmem>>, vector<1x8x32xf32>
    %1 = vector.shape_cast %0 : vector<1x8x32xf32> to vector<8x32xf32>
    %c0_2 = arith.constant 0 : index
    %c0_3 = arith.constant 0 : index
    %c0_4 = arith.constant 0 : index
    %2 = vector.load %arg3[%c0_2, %c0_3, %c0_4] : memref<1x1x32xf32, #tpu.memory_space<vmem>>, vector<1x1x32xf32>
    %3 = vector.shape_cast %2 : vector<1x1x32xf32> to vector<1x32xf32>
    %c0_5 = arith.constant 0 : index
    %c0_6 = arith.constant 0 : index
    %c0_7 = arith.constant 0 : index
    %4 = vector.load %arg4[%c0_5, %c0_6, %c0_7] : memref<1x1x32xf32, #tpu.memory_space<vmem>>, vector<1x1x32xf32>
    %5 = vector.shape_cast %4 : vector<1x1x32xf32> to vector<1x32xf32>
    %6 = arith.mulf %1, %1 : vector<8x32xf32>
    %cst = arith.constant dense<0.000000e+00> : vector<8xf32>
    %7 = vector.multi_reduction <add>, %6, %cst [1] : vector<8x32xf32> to vector<8xf32>
    %8 = vector.shape_cast %7 : vector<8xf32> to vector<8x1xf32>
    %cst_8 = arith.constant 3.125000e-02 : f32
    %9 = vector.broadcast %cst_8 : f32 to vector<8x1xf32>
    %10 = arith.mulf %8, %9 : vector<8x1xf32>
    %cst_9 = arith.constant 9.99999997E-7 : f32
    %11 = vector.broadcast %cst_9 : f32 to vector<8x1xf32>
    %12 = arith.addf %10, %11 : vector<8x1xf32>
    %13 = math.rsqrt %12 : vector<8x1xf32>
    %14 = vector.broadcast %13 : vector<8x1xf32> to vector<8x32xf32>
    %15 = arith.mulf %1, %14 : vector<8x32xf32>
    %16 = vector.broadcast %3 : vector<1x32xf32> to vector<8x32xf32>
    %17 = arith.mulf %16, %15 : vector<8x32xf32>
    %18 = vector.broadcast %5 : vector<1x32xf32> to vector<8x32xf32>
    %19 = arith.addf %17, %18 : vector<8x32xf32>
    %c0_10 = arith.constant 0 : index
    %c0_11 = arith.constant 0 : index
    %c0_12 = arith.constant 0 : index
    %20 = vector.load %arg5[%c0_10, %c0_11, %c0_12] : memref<1x8x32xf32, #tpu.memory_space<vmem>>, vector<1x8x32xf32>
    %21 = vector.shape_cast %20 : vector<1x8x32xf32> to vector<8x32xf32>
    %22 = vector.shape_cast %19 : vector<8x32xf32> to vector<1x8x32xf32>
    tpu.vector_store %arg5[%c0_10, %c0_11, %c0_12], %22 {strides = array<i32>} : memref<1x8x32xf32, #tpu.memory_space<vmem>>, vector<1x8x32xf32>,
    return
  }
  func.func @transform_0(%arg0: i32, %arg1: i32) -> (i32, i32, i32) {
    %c0_i32 = arith.constant 0 : i32
    %c0_i32_0 = arith.constant 0 : i32
    return %arg0, %arg1, %c0_i32 : i32, i32, i32
  }
  func.func @transform_1(%arg0: i32, %arg1: i32) -> (i32, i32, i32) {
    %c0_i32 = arith.constant 0 : i32
    %c0_i32_0 = arith.constant 0 : i32
    %c0_i32_1 = arith.constant 0 : i32
    return %arg0, %c0_i32, %c0_i32_0 : i32, i32, i32
  }
  func.func @transform_2(%arg0: i32, %arg1: i32) -> (i32, i32, i32) {
    %c0_i32 = arith.constant 0 : i32
    %c0_i32_0 = arith.constant 0 : i32
    %c0_i32_1 = arith.constant 0 : i32
    return %arg0, %c0_i32, %c0_i32_0 : i32, i32, i32
  }
  func.func @transform_3(%arg0: i32, %arg1: i32) -> (i32, i32, i32) {
    %c0_i32 = arith.constant 0 : i32
    %c0_i32_0 = arith.constant 0 : i32
    return %arg0, %arg1, %c0_i32 : i32, i32, i32
  }
}

</mosaic_0001>

<bundles_post_ra>
// kernel: tpu_custom_call.1
= control target key start
LH: loop header
LB: loop body
LE: loop exit
PB: predicated region body
PF: predicated region fallthrough
CT: control target
= control target key end

     0   :  { %8 = vsyncpa [#allocation3], 0  ;;  %s823_s0 = inlined_call_operand.hbm [shape: f32[2,8,32], index: 0, kind: input, shape index: {}]   ;;  %s824_s1 = inlined_call_operand.hbm [shape: f32[2,1,32], index: 1, kind: input, shape index: {}]   ;;  %s825_s2 = inlined_call_operand.vmem [shape: f32[2,1,32], index: 2, kind: input, shape index: {}]   ;;  %s826_s3 = inlined_call_operand.hbm [shape: f32[2,8,32], index: 3, kind: output, shape index: {}]  }
   0x1   :  { %10 = vsyncpa [#allocation3 + $0x1], 0 }
   0x2   :  { %11 = vsyncpa [#allocation6], 0 }
   0x3   :  { %13 = vsyncpa [#allocation6 + $0x1], 0 }
   0x4   :  { %14 = vsyncpa [#allocation4], 0 }
   0x5   :  { %16 = vsyncpa [#allocation4 + $0x1], 0  ;;  %s652_s12 = smov 0   ;;  %s654_s13 = smov 0  }
   0x6   :  { %s656_s14 = smov 0   ;;  %s658_s15 = smov 0  }
   0x7   :  { %s660_s16 = smov 0   ;;  %s662_s17 = smov 0  }
   0x8 LB: > { %s402_s18 = sadd.s32 4294967295, %s627_s17   ;;  %s403_s19 = sadd.s32 4294967294, %s627_s17   ;;  %s627_s17 = sphi %s662_s17, %s22_s17   ;;  %s623_s16 = sphi %s660_s16, %s838_s16   ;;  %s619_s15 = sphi %s658_s15, %s837_s15   ;;  %s615_s14 = sphi %s656_s14, %s836_s14   ;;  %s611_s13 = sphi %s654_s13, %s835_s13   ;;  %s607_s12 = sphi %s652_s12, %s834_s12  }
   0x9   : > { %s34_s20 = sadd.s32 1, %s623_s16  ;;  %s43_s21 = sadd.s32 1, %s615_s14 }
   0xa   : > { %p36_p0 = scmp.ge.s32.totalorder %s34_s20, 2  ;;  %p50_p1 = scmp.ne.s32.totalorder %s615_s14, %s611_s13 }
   0xb   : > { %p51_p2 = scmp.eq.s32.totalorder %s627_s17, 0  ;;  %p56_p3 = scmp.ne.s32.totalorder %s611_s13, %s607_s12 }
   0xc   : > { %s840_s20 = smov (%p36_p0, %s34_s20), 0  ;;  %p57_p5 = scmp.eq.s32.totalorder %s402_s18, 0 }
   0xd   : > { %p693_p4 = por %p51_p2, %p50_p1  ;;  %s38_s23 = ssub.s32 %s623_s16, %s840_s20 }
   0xe   : > { %p134_p6 = scmp.eq.s32.totalorder %s402_s18, 1  ;;  %p41_p7 = scmp.eq.s32.totalorder %s38_s23, 0 }
   0xf   : > { %p699_p8 = por %p57_p5, %p56_p3  ;;  %p140_p10 = scmp.eq.s32.totalorder %s403_s19, 1 }
  0x10   : > { %p703_p9 = por %p134_p6, %p50_p1  ;;  %p435_p13 = scmp.lt.s32.totalorder %s627_s17, 2 }
  0x11   : > { %s708_s26 = scalar_select %p41_p7, %s615_s14, %s43_s21  }
  0x12   : > { %p710_p11 = por %p140_p10, %p56_p3  ;;  %s717_s28 = sand.u32 1, %s615_s14  }
  0x13   : > { %s406_s29 = sshll.u32 %s717_s28, 3  ;;  %s407_s30 = sshll.u32 %s623_s16, 7 }
  0x14   : > { %s170_s6 = scalar_lea.hbm %s823_s0, %s407_s30  ;;  %s164_s7 = scalar_lea.vmem [#allocation2], %s406_s29 }
  0x15   : > { %s172_s8 = sshll.u32 %s164_s7, 4  ;;  %p726_p0 = pnand %p435_p13, %p693_p4  ;;  %s173_s8 = int_to_ptr.vmem [resolvable:$true] %s172_s8 }
  0x16   : > { %p409_p1 = scmp.ge.s32.totalorder %s627_s17, 1  ;;  %p200_p2 = scmp.lt.s32.totalorder %s627_s17, 3 }
  0x17   : > { %s161_s10 = scalar_lea.sflag [#allocation3], %s717_s28  ;;  %p489_p3 = pneg %p726_p0 }
  0x18   : > { %s500_s11 = scalar_lea.vmem %s173_s8, 128  ;;  %s629_s18 = smov [#allocation2]  }
  0x19   : > { %p501_p5 = scmp.ne.s32.totalorder %s173_s8, %s500_s11  ;;  %s505_s19 = sshll.u32 %s629_s18, 4  ;;  %s506_s19 = int_to_ptr.vmem [resolvable:$false] %s505_s19 }
  0x1a   : > { %s507_s21 = scalar_lea.vmem %s506_s19, 256  ;;  %p508_p4 = scmp.lt.s32.totalorder %s173_s8, %s506_s19 }
  0x1b   : > { %p503_p6 = pnand %p501_p5, %p489_p3  ;;  %p509_p10 = scmp.lt.s32.totalorder %s507_s21, %s500_s11 }
  0x1d   : > { %p504_p7 = pneg %p503_p6  ;;  %p510_p13 = por %p509_p10, %p508_p4 }
  0x1f   : > { %p511_p12 = pnand %p510_p13, %p504_p7 }
  0x21   : > { %514 = shalt.err (!%p511_p12)
}
  0x22   : > { %427 = dma.hbm_to_vmem [thread:$0]  (!%p726_p0), %s170_s6, 128, %s173_s8, %s161_s10  }
  0x23   : > { %p744_p5 = pnand %p409_p1, %p200_p2  ;;  %s408_s23 = sshll.u32 %s623_s16, 4 }
  0x24   : > { %s182_s29 = scalar_lea.vmem [#allocation5], %s717_s28  ;;  %s187_s7 = scalar_lea.hbm %s824_s1, %s408_s23 }
  0x25   : > { %s189_s30 = sshll.u32 %s182_s29, 4  ;;  %s180_s11 = scalar_lea.sflag [#allocation6], %s717_s28  ;;  %s190_s30 = int_to_ptr.vmem [resolvable:$true] %s189_s30 }
  0x26   : > { %s528_s18 = scalar_lea.vmem %s190_s30, 16  ;;  %s630_s6 = smov [#allocation5]  }
  0x27   : > { %p529_p12 = scmp.ne.s32.totalorder %s190_s30, %s528_s18  ;;  %s533_s8 = sshll.u32 %s630_s6, 4  ;;  %s534_s8 = int_to_ptr.vmem [resolvable:$false] %s533_s8 }
  0x28   : > { %s535_s10 = scalar_lea.vmem %s534_s8, 32  ;;  %p536_p1 = scmp.lt.s32.totalorder %s190_s30, %s534_s8 }
  0x29   : > { %p531_p6 = pnand %p529_p12, %p489_p3  ;;  %p537_p2 = scmp.lt.s32.totalorder %s535_s10, %s528_s18 }
  0x2b   : > { %p532_p7 = pneg %p531_p6  ;;  %p538_p4 = por %p537_p2, %p536_p1 }
  0x2d   : > { %p539_p10 = pnand %p538_p4, %p532_p7 }
  0x2f   : > { %542 = shalt.err (!%p539_p10)
}
  0x30   : > { %430 = dma.hbm_to_vmem [thread:$0]  (!%p726_p0), %s187_s7, 16, %s190_s30, %s180_s11  }
  0x31   : > { %204 = sbr.rel (%p744_p5) target bundleno = 236 (0xec), region = 32  ;;  %s762_s28 = sand.u32 (!%p744_p5), 1, %s611_s13  }
  0x32   : > { %s410_s19 = sshll.u32 (!%p744_p5), %s762_s28, 3  ;;  %s207_s21 = scalar_lea.sflag (!%p744_p5), [#allocation3], %s762_s28 }
  0x33   : > { %s210_s23 = scalar_lea.vmem (!%p744_p5), [#allocation2], %s410_s19 }
  0x36   : > { %594 = dma.done.wait (%p699_p8), %s207_s21, 128  }
  0x37   : > { %596 = vsyncadd (%p699_p8), %s207_s21, 4294967168  ;;  %s216_s9 = scalar_lea.sflag [#allocation6], %s762_s28  ;;  %s218_s22 = scalar_lea.vmem [#allocation5], %s762_s28 }
  0x38   : > { %598 = dma.done.wait (%p699_p8), %s216_s9, 16  }
  0x39   : > { %600 = vsyncadd (%p699_p8), %s216_s9, 4294967280  ;;  %v251_v0 = vld [vmem:[%s210_s23] sm:$0xff]  ;;  %vm255_vm0 = vcmask 261120   ;;  %p248_p0 = scmp.lt.s32.totalorder %s619_s15, 1  ;;  %s415_s5 = sshll.u32 %s619_s15, 7 }
  0x3a   : > { %v254_v1 = vmul.f32 %v251_v0, %v251_v0  ;;  %v412_v7 = vld [vmem:[%s218_s22] ss:$0 sm:$0xff]  ;;  %s247_s7 = scalar_lea.vmem [#allocation7], %s410_s19  ;;  %s291_s8 = scalar_lea.hbm %s826_s3, %s415_s5 }
  0x3b   : > { %s249_s29 = scalar_select %p248_p0, %s619_s15, 1 }
  0x3c   : > { %v256_v2 = vsel %vm255_vm0, %v254_v1, 0.0  ;;  %s293_s11 = sshll.u32 %s247_s7, 4  ;;  %s279_s10 = scalar_lea.sflag [#allocation4], %s762_s28  ;;  %s294_s11 = int_to_ptr.vmem [resolvable:$true] %s293_s11 }
  0x3d   : > { %257 = vadd.xlane.f32.xlu0 %v256_v2  ;;  %s250_s24 = scalar_lea.vmem %s825_s2, %s249_s29  ;;  %s543_s21 = scalar_lea.vmem %s294_s11, 128 }
  0x3e   : > { %v413_v9 = vld [vmem:[%s250_s24] ss:$0 sm:$0xff]  ;;  %p544_p8 = scmp.ne.s32.totalorder %s294_s11, %s543_s21  ;;  %s631_s23 = smov [#allocation7]  }
  0x3f   : > { %s547_s9 = sshll.u32 %s631_s23, 4  ;;  %s548_s9 = int_to_ptr.vmem [resolvable:$false] %s547_s9 }
  0x40   : > { %p545_p3 = pnand %p544_p8, %p703_p9  ;;  %s549_s15 = scalar_lea.vmem %s548_s9, 256 }
  0x41   : > { %p550_p5 = scmp.lt.s32.totalorder %s294_s11, %s548_s9  ;;  %p551_p12 = scmp.lt.s32.totalorder %s549_s15, %s543_s21 }
  0x42   : > { %p546_p13 = pneg %p545_p3 }
  0x43   : > { %p552_p6 = por %p551_p12, %p550_p5 }
  0x45   : > { %p553_p7 = pnand %p552_p6, %p546_p13 }
  0xc6   : > { %v258_v3 = vpop.xlane.xlu0 %257 }
  0xc7   : > { %v259_v4 = vmul.f32 0.03125, %v258_v3 }
  0xc9   : > { %v260_v5 = vadd.f32 1e-06, %v259_v4 }
  0xcb   : > { %485 = vrsqrt.f32 %v260_v5 }
  0xd8   : > { %v486_v6 = vpop.eup %485 }
  0xd9   : > { %v262_v8 = vmul.f32 %v486_v6, %v251_v0 }
  0xdb   : > { %v269_v10 = vmul.f32 %v412_v7, %v262_v8 }
  0xdd   : > { %v276_v11 = vadd.f32 %v413_v9, %v269_v10 }
  0xdf   : > { %277 = vst.msk [vmem:[%s247_s7] sm:$0xff] %vm255_vm0, %v276_v11 }
  0xe0   : > { %556 = shalt.err (!%p553_p7)
}
  0xe1   : > { %s557_s19 = scalar_lea.hbm %s291_s8, 128  ;;  %s561_s29 = scalar_lea.hbm %s826_s3, 256 }
  0xe2   : > { %p558_p1 = scmp.ne.s32.totalorder %s291_s8, %s557_s19  ;;  %p562_p10 = scmp.lt.s32.totalorder %s291_s8, %s826_s3 }
  0xe3   : > { %p563_p0 = scmp.lt.s32.totalorder %s561_s29, %s557_s19 }
  0xe4   : > { %p559_p2 = pnand %p558_p1, %p703_p9 }
  0xe5   : > { %p564_p8 = por %p563_p0, %p562_p10 }
  0xe6   : > { %p560_p4 = pneg %p559_p2 }
  0xe8   : > { %p565_p3 = pnand %p564_p8, %p560_p4 }
  0xea   : > { %568 = shalt.err (!%p565_p3)
}
  0xeb   : > { %422 = dma.vmem_to_hbm [thread:$0]  (%p703_p9), %s294_s11, 128, %s291_s8, %s279_s10  }
  0xec PF: > { %s305_s24 = sand.u32 1, %s607_s12   ;;  %p833_p13 = scmp.ge.s32.totalorder %s627_s17, 2 }
  0xed   : > { %s306_s5 = scalar_lea.sflag [#allocation4], %s305_s24 }
  0xee   : > { %p432_p5 = pnand %p833_p13, %p710_p11 }
  0xf0   : > { %p433_p12 = pneg %p432_p5 }
  0xf2   : > { %602 = dma.done.wait (%p433_p12), %s306_s5, 128  }
  0xf3   : > { %604 = vsyncadd (%p433_p12), %s306_s5, 4294967168  ;;  %s22_s17 = sadd.s32 1, %s627_s17   ;;  %s834_s12 = smov %s611_s13 }
  0xf4   : > { %p19_p6 = scmp.ge.s32.totalorder %s22_s17, 4   ;;  %s835_s13 = smov %s615_s14 }
  0xf5   : > { %s836_s14 = smov %s708_s26  ;;  %s837_s15 = smov %s623_s16 }
  0xf6   : > { %s838_s16 = smov %s840_s20  ;;  %21 = sbr.rel (!%p19_p6) target bundleno = 8 (0x8), region = 93 }
  0xfb   :  { %311 = vsyncpa [#allocation3], 1 }
  0xfc   :  { %313 = vsyncpa [#allocation3 + $0x1], 1 }
  0xfd   :  { %314 = vsyncpa [#allocation6], 1 }
  0xfe   :  { %316 = vsyncpa [#allocation6 + $0x1], 1 }
  0xff   :  { %317 = vsyncpa [#allocation4], 1 }
 0x100   :  { %319 = vsyncpa [#allocation4 + $0x1], 1 }

</bundles_post_ra>
